<compile_context>
chip_gen: v6e
topology: v6e:2x2x1
jax: 0.10.0
libtpu: 0.0.40
codegen_flags: <defaults>
</compile_context>

<pallas_src>
from functools import partial

import jax
import jax.numpy as jnp
import numpy as np
from jax.experimental import pallas as pl
from jax.experimental.pallas import tpu as pltpu

HIDDEN = 128   # nn.Linear(stateDim, 128)
SUBLANE = 8    # row tiles must be a multiple of the 8-row sublane


def _round_up(x, m):
    return (x + m - 1) // m * m


def hypernet_kernel(x_ref, w1_ref, b1_ref, w2_ref, b2_ref, o_ref):
    # x:  (TB, S)      w1: (S, H)    b1: (1, H)   (biases always f32)
    # w2: (H, O)       b2: (1, O)    o:  (TB, O)
    # MXU operands may be bf16 (weights pre-cast, x cast here after the VMEM
    # load so HBM traffic stays f32-only); accumulation / bias / ReLU are f32.
    x = x_ref[...].astype(w1_ref.dtype)
    h = jnp.dot(x, w1_ref[...], preferred_element_type=jnp.float32)
    h = jnp.maximum(h + b1_ref[...], 0.0)                      # VPU, f32
    y = jnp.dot(h.astype(w2_ref.dtype), w2_ref[...],
                preferred_element_type=jnp.float32) + b2_ref[...]
    o_ref[...] = y.astype(o_ref.dtype)


def prepare_params(w1, b1, w2, b2, *, use_bf16_matmul=False):
    """One-time parameter prep (hoisted out of the per-call path).

    Weights stored (in, out); biases reshaped to (1, N) f32.  If
    use_bf16_matmul, keep persistent bf16 copies of the MXU weight operands.
    """
    b1_2d = jnp.asarray(b1, jnp.float32).reshape(1, -1)
    b2_2d = jnp.asarray(b2, jnp.float32).reshape(1, -1)
    if use_bf16_matmul:
        w1 = w1.astype(jnp.bfloat16)
        w2 = w2.astype(jnp.bfloat16)
    return w1, b1_2d, w2, b2_2d


def _choose_row_tile(B, block_rows, min_steps):
    n_steps = max(min_steps, pl.cdiv(B, block_rows))
    tb = _round_up(pl.cdiv(B, n_steps), SUBLANE)
    return tb


@partial(jax.jit, static_argnames=("block_rows", "min_steps"))
def hypernetwork_forward(state, w1, b1_2d, w2, b2_2d, *,
                         block_rows=512, min_steps=1):
    """(state @ W1 + b1) -> ReLU -> (@ W2 + b2), gridded over rows.

    Set min_steps>=2 on v7x so the row axis has work for both TensorCores.
    """
    B, S = state.shape
    H = w1.shape[1]
    O = w2.shape[1]
    out_dtype = state.dtype

    # Only the batch dim is padded (to a multiple of the row tile); feature
    # dims stay at their natural sizes (full-extent blocks are legal and keep
    # HBM traffic to exactly the useful bytes).  Under jit this pad and the
    # final row slice fuse around the pallas_call.
    TB = _choose_row_tile(B, block_rows, min_steps)
    B_pad = _round_up(B, TB)
    if B_pad != B:
        state = jnp.pad(state, ((0, B_pad - B), (0, 0)))

    out = pl.pallas_call(
        hypernet_kernel,
        out_shape=jax.ShapeDtypeStruct((B_pad, O), out_dtype),
        grid_spec=pltpu.PrefetchScalarGridSpec(
            num_scalar_prefetch=0,
            grid=(B_pad // TB,),
            in_specs=[
                pl.BlockSpec((TB, S), lambda i: (i, 0)),   # row tile of x
                pl.BlockSpec((S, H), lambda i: (0, 0)),    # W1 resident
                pl.BlockSpec((1, H), lambda i: (0, 0)),    # b1 resident
                pl.BlockSpec((H, O), lambda i: (0, 0)),    # W2 resident
                pl.BlockSpec((1, O), lambda i: (0, 0)),    # b2 resident
            ],
            out_specs=pl.BlockSpec((TB, O), lambda i: (i, 0)),
        ),
        compiler_params=pltpu.CompilerParams(
            # Rows are independent -> shards across v7x's 2 TensorCores;
            # measured near-no-op on v5e/v6e.
            dimension_semantics=("parallel",),
        ),
    )(state, w1, b1_2d, w2, b2_2d)

    return out[:B]


def init_linear_params(key, fan_in, fan_out, dtype=jnp.float32):
    # Deterministic init mimicking PyTorch nn.Linear default:
    # weights & bias ~ U(-1/sqrt(fan_in), 1/sqrt(fan_in)); stored (in, out)
    # so the kernel computes x @ W + b (== x @ W.T for PyTorch's (out, in) W).
    kw, kb = jax.random.split(key)
    bound = 1.0 / np.sqrt(fan_in)
    w = jax.random.uniform(kw, (fan_in, fan_out), dtype, -bound, bound)
    b = jax.random.uniform(kb, (fan_out,), dtype, -bound, bound)
    return w, b


def reference_forward(state, w1, b1, w2, b2):
    h = jnp.maximum(state @ w1 + b1, 0.0)
    return h @ w2 + b2


if __name__ == "__main__":
    key = jax.random.PRNGKey(0)
    k_state, k_l1, k_l2, k_big = jax.random.split(key, 4)

    batch = 8
    state_dim = 32      # stateDim
    output_dim = 16     # outputDim (e.g. nAgents * embedDim in QMIX)

    state = jax.random.normal(k_state, (batch, state_dim), jnp.float32)
    w1, b1 = init_linear_params(k_l1, state_dim, HIDDEN)
    w2, b2 = init_linear_params(k_l2, HIDDEN, output_dim)

    params_f32 = prepare_params(w1, b1, w2, b2)
    params_bf16 = prepare_params(w1, b1, w2, b2, use_bf16_matmul=True)

    # --- small-batch f32 path (single grid step) ------------------------------
    out = jax.block_until_ready(hypernetwork_forward(state, *params_f32))
    ref = reference_forward(state, w1, b1, w2, b2)
    np.testing.assert_allclose(np.asarray(out), np.asarray(ref),
                               rtol=1e-5, atol=1e-5)

    # --- larger batch: adaptive row tile + batch padding (B=300 -> TB=152) ----
    big_batch = 300
    state_big = jax.random.normal(k_big, (big_batch, state_dim), jnp.float32)
    out_big = jax.block_until_ready(
        hypernetwork_forward(state_big, *params_f32, block_rows=256,
                             min_steps=2))
    ref_big = reference_forward(state_big, w1, b1, w2, b2)
    np.testing.assert_allclose(np.asarray(out_big), np.asarray(ref_big),
                               rtol=1e-5, atol=1e-5)

    # --- bf16 MXU weight operands (f32 accum, in-kernel x cast) ---------------
    out_bf16 = jax.block_until_ready(
        hypernetwork_forward(state_big, *params_bf16, block_rows=256,
                             min_steps=2))
    np.testing.assert_allclose(np.asarray(out_bf16), np.asarray(ref_big),
                               rtol=3e-2, atol=3e-2)

    print("KERNEL_OK")
</pallas_src>

<mosaic_0001>
module attributes {stable_mosaic.version = 11 : i64} {
  func.func @hypernet_kernel(%arg0: i32, %arg1: memref<8x32xf32, #tpu.memory_space<vmem>>, %arg2: memref<32x128xf32, #tpu.memory_space<vmem>>, %arg3: memref<1x128xf32, #tpu.memory_space<vmem>>, %arg4: memref<128x16xf32, #tpu.memory_space<vmem>>, %arg5: memref<1x16xf32, #tpu.memory_space<vmem>>, %arg6: memref<8x16xf32, #tpu.memory_space<vmem>>) attributes {dimension_semantics = [#tpu.dimension_semantics<parallel>], iteration_bounds = array<i64: 1>, scalar_prefetch = 0 : i64, scratch_operands = 0 : i64, tpu.core_type = #tpu.core_type<tc>, window_params = [{transform_indices = @transform_0, window_bounds = array<i64: 8, 32>}, {pipeline_mode = #tpu.pipeline_mode<synchronous>, transform_indices = @transform_1, window_bounds = array<i64: 32, 128>}, {pipeline_mode = #tpu.pipeline_mode<synchronous>, transform_indices = @transform_2, window_bounds = array<i64: 1, 128>}, {pipeline_mode = #tpu.pipeline_mode<synchronous>, transform_indices = @transform_3, window_bounds = array<i64: 128, 16>}, {pipeline_mode = #tpu.pipeline_mode<synchronous>, transform_indices = @transform_4, window_bounds = array<i64: 1, 16>}, {transform_indices = @transform_5, window_bounds = array<i64: 8, 16>}]} {
    %c0 = arith.constant 0 : index
    %c0_0 = arith.constant 0 : index
    %0 = vector.load %arg1[%c0, %c0_0] : memref<8x32xf32, #tpu.memory_space<vmem>>, vector<8x32xf32>
    %c0_1 = arith.constant 0 : index
    %c0_2 = arith.constant 0 : index
    %1 = vector.load %arg2[%c0_1, %c0_2] : memref<32x128xf32, #tpu.memory_space<vmem>>, vector<32x128xf32>
    %cst = arith.constant dense<0.000000e+00> : vector<8x128xf32>
    %2 = tpu.matmul %0, %1, %cst {dimension_numbers = #tpu.dot_dimension_numbers<[1], [0], [0], [1], [0, 0, 1, 1], [], []>} : vector<8x32xf32>, vector<32x128xf32>, vector<8x128xf32> -> vector<8x128xf32>
    %c0_3 = arith.constant 0 : index
    %c0_4 = arith.constant 0 : index
    %3 = vector.load %arg3[%c0_3, %c0_4] : memref<1x128xf32, #tpu.memory_space<vmem>>, vector<1x128xf32>
    %4 = vector.broadcast %3 : vector<1x128xf32> to vector<8x128xf32>
    %5 = arith.addf %2, %4 : vector<8x128xf32>
    %cst_5 = arith.constant 0.000000e+00 : f32
    %6 = vector.broadcast %cst_5 : f32 to vector<8x128xf32>
    %7 = arith.maximumf %5, %6 : vector<8x128xf32>
    %c0_6 = arith.constant 0 : index
    %c0_7 = arith.constant 0 : index
    %8 = vector.load %arg4[%c0_6, %c0_7] : memref<128x16xf32, #tpu.memory_space<vmem>>, vector<128x16xf32>
    %cst_8 = arith.constant dense<0.000000e+00> : vector<8x16xf32>
    %9 = tpu.matmul %7, %8, %cst_8 {dimension_numbers = #tpu.dot_dimension_numbers<[1], [0], [0], [1], [0, 0, 1, 1], [], []>} : vector<8x128xf32>, vector<128x16xf32>, vector<8x16xf32> -> vector<8x16xf32>
    %c0_9 = arith.constant 0 : index
    %c0_10 = arith.constant 0 : index
    %10 = vector.load %arg5[%c0_9, %c0_10] : memref<1x16xf32, #tpu.memory_space<vmem>>, vector<1x16xf32>
    %11 = vector.broadcast %10 : vector<1x16xf32> to vector<8x16xf32>
    %12 = arith.addf %9, %11 : vector<8x16xf32>
    %c0_11 = arith.constant 0 : index
    %c0_12 = arith.constant 0 : index
    %13 = vector.load %arg6[%c0_11, %c0_12] : memref<8x16xf32, #tpu.memory_space<vmem>>, vector<8x16xf32>
    tpu.vector_store %arg6[%c0_11, %c0_12], %12 {strides = array<i32>} : memref<8x16xf32, #tpu.memory_space<vmem>>, vector<8x16xf32>,
    return
  }
  func.func @transform_0(%arg0: i32) -> (i32, i32) {
    %c0_i32 = arith.constant 0 : i32
    %c0_i32_0 = arith.constant 0 : i32
    return %arg0, %c0_i32 : i32, i32
  }
  func.func @transform_1(%arg0: i32) -> (i32, i32) {
    %c0_i32 = arith.constant 0 : i32
    %c0_i32_0 = arith.constant 0 : i32
    %c0_i32_1 = arith.constant 0 : i32
    return %c0_i32, %c0_i32_0 : i32, i32
  }
  func.func @transform_2(%arg0: i32) -> (i32, i32) {
    %c0_i32 = arith.constant 0 : i32
    %c0_i32_0 = arith.constant 0 : i32
    %c0_i32_1 = arith.constant 0 : i32
    return %c0_i32, %c0_i32_0 : i32, i32
  }
  func.func @transform_3(%arg0: i32) -> (i32, i32) {
    %c0_i32 = arith.constant 0 : i32
    %c0_i32_0 = arith.constant 0 : i32
    %c0_i32_1 = arith.constant 0 : i32
    return %c0_i32, %c0_i32_0 : i32, i32
  }
  func.func @transform_4(%arg0: i32) -> (i32, i32) {
    %c0_i32 = arith.constant 0 : i32
    %c0_i32_0 = arith.constant 0 : i32
    %c0_i32_1 = arith.constant 0 : i32
    return %c0_i32, %c0_i32_0 : i32, i32
  }
  func.func @transform_5(%arg0: i32) -> (i32, i32) {
    %c0_i32 = arith.constant 0 : i32
    %c0_i32_0 = arith.constant 0 : i32
    return %arg0, %c0_i32 : i32, i32
  }
}

</mosaic_0001>

<bundles_post_ra>
// kernel: hypernetwork_forward.1
= control target key start
LH: loop header
LB: loop body
LE: loop exit
PB: predicated region body
PF: predicated region fallthrough
CT: control target
= control target key end

     0   :  { %v313_v1 = vmov 0.0   ;;  %vm314_vm0 = vmmov 0   ;;  %vm33_vm1 = vcmask 261120   ;;  %s442_s0 = inlined_call_operand.vmem [shape: f32[8,32], index: 0, kind: input, shape index: {}]   ;;  %s443_s1 = inlined_call_operand.vmem [shape: f32[32,128], index: 1, kind: input, shape index: {}]   ;;  %s444_s2 = inlined_call_operand.vmem [shape: f32[1,128], index: 2, kind: input, shape index: {}]   ;;  %s445_s3 = inlined_call_operand.vmem [shape: f32[128,16], index: 3, kind: input, shape index: {}]   ;;  %s446_s4 = inlined_call_operand.vmem [shape: f32[1,16], index: 4, kind: input, shape index: {}]   ;;  %s447_s5 = inlined_call_operand.hbm [shape: f32[8,16], index: 5, kind: output, shape index: {}]  }
   0x1   :  { %v25_v0 = vld [vmem:[%s443_s1 + $0x18] sm:$0xff]  ;;  %242 = vmatprep.subr.mxu0 %v313_v1  ;;  %v24_v2 = vld [vmem:[%s443_s1 + $0x10] sm:$0xff]  ;;  %250 = vmatprep.mubr.msk.f32.mxu0 %vm314_vm0, %v313_v1  ;;  %v23_v5 = vld [vmem:[%s443_s1 + $0x8] sm:$0xff] }
   0x2   :  { %v123_v3 = vld [vmem:[%s445_s3 + $0x78] sm:$0xff]  ;;  %243 = vmatpush3.msra.mxu0 %v25_v0  ;;  %253 = vmatprep.subr.mxu1 %v313_v1  ;;  %v122_v4 = vld [vmem:[%s445_s3 + $0x70] sm:$0xff]  ;;  %v121_v6 = vld [vmem:[%s445_s3 + $0x68] sm:$0xff] }
   0x3   :  { %244 = vmatprep.subr.mxu0 %v313_v1  ;;  %254 = vmatpush3.msra.mxu1 %v123_v3  ;;  %v22_v7 = vld [vmem:[%s443_s1] sm:$0xff] }
   0x4   :  { %245 = vmatpush3.msra.mxu0 %v24_v2  ;;  %255 = vmatprep.subr.mxu1 %v313_v1  ;;  %v21_v8 = vld [vmem:[%s442_s0] sm:$0xff] }
   0x5   :  { %246 = vmatprep.subr.mxu0 %v313_v1  ;;  %256 = vmatpush3.msra.mxu1 %v122_v4  ;;  %v120_v9 = vld [vmem:[%s445_s3 + $0x60] sm:$0xff] }
   0x6   :  { %247 = vmatpush3.msra.mxu0 %v23_v5  ;;  %257 = vmatprep.subr.mxu1 %v313_v1 }
   0x7   :  { %10 = vsyncpa [#allocation3], 0  ;;  %248 = vmatprep.subr.mxu0 %v313_v1  ;;  %258 = vmatpush3.msra.mxu1 %v121_v6  ;;  %v119_v10 = vld [vmem:[%s445_s3 + $0x58] sm:$0xff]  ;;  %v118_v11 = vld [vmem:[%s445_s3 + $0x50] sm:$0xff]  ;;  %s315_s11 = smov [#allocation2]   ;;  %vm201_vm2 = vcmask 130048  }
   0x8   :  { %249 = vmatpush3.msra.mxu0 %v22_v7  ;;  %259 = vmatprep.subr.mxu1 %v313_v1  ;;  %v117_v12 = vld [vmem:[%s445_s3 + $0x48] sm:$0xff]  ;;  %v116_v13 = vld [vmem:[%s445_s3 + $0x40] sm:$0xff]  ;;  %v115_v14 = vld [vmem:[%s445_s3 + $0x38] sm:$0xff]  ;;  %s209_s0 = sshll.u32 %s315_s11, 4  ;;  %s210_s0 = int_to_ptr.vmem [resolvable:$true] %s209_s0 }
   0x9   :  { %251 = vmatmul.mubr.msk.f32.vlgmr.msra.gmra.mxu0 %vm33_vm1, %v21_v8  ;;  %260 = vmatpush3.msra.mxu1 %v120_v9  ;;  %v114_v15 = vld [vmem:[%s445_s3 + $0x30] sm:$0xff]  ;;  %v113_v16 = vld [vmem:[%s445_s3 + $0x28] sm:$0xff]  ;;  %v112_v17 = vld [vmem:[%s445_s3 + $0x20] sm:$0xff]  ;;  %p296_p1 = scmp.lt.s32.totalorder %s210_s0, %s210_s0 }
   0xa   :  { %261 = vmatprep.subr.mxu1 %v313_v1  ;;  %285 = vmatprep.mubr.msk.f32.mxu1 %vm314_vm0, %v313_v1  ;;  %v111_v18 = vld [vmem:[%s445_s3 + $0x18] sm:$0xff]  ;;  %v110_v19 = vld [vmem:[%s445_s3 + $0x10] sm:$0xff]  ;;  %v109_v20 = vld [vmem:[%s445_s3 + $0x8] sm:$0xff] }
   0xb   :  { %262 = vmatpush3.msra.mxu1 %v119_v10  ;;  %v108_v21 = vld [vmem:[%s445_s3] sm:$0xff]  ;;  %s291_s3 = scalar_lea.vmem %s210_s0, 128 }
   0xc   :  { %263 = vmatprep.subr.mxu1 %v313_v1  ;;  %v217_v22 = vld [vmem:[%s444_s2] ss:$0 sm:$0xff]  ;;  %p292_p0 = scmp.ne.s32.totalorder %s210_s0, %s291_s3  ;;  %p297_p2 = scmp.lt.s32.totalorder %s291_s3, %s291_s3 }
   0xd   :  { %264 = vmatpush3.msra.mxu1 %v118_v11  ;;  %v219_v27 = vld [vmem:[%s446_s4] ss:$0 sm:$0xff] }
   0xe   :  { %265 = vmatprep.subr.mxu1 %v313_v1  ;;  %p298_p3 = por %p297_p2, %p296_p1 }
   0xf   :  { %266 = vmatpush3.msra.mxu1 %v117_v12 }
  0x10   :  { %267 = vmatprep.subr.mxu1 %v313_v1  ;;  %p299_p4 = pnand %p298_p3, %p292_p0 }
  0x11   :  { %268 = vmatpush3.msra.mxu1 %v116_v13 }
  0x12   :  { %269 = vmatprep.subr.mxu1 %v313_v1 }
  0x13   :  { %270 = vmatpush3.msra.mxu1 %v115_v14 }
  0x14   :  { %271 = vmatprep.subr.mxu1 %v313_v1 }
  0x15   :  { %272 = vmatpush3.msra.mxu1 %v114_v15 }
  0x16   :  { %273 = vmatprep.subr.mxu1 %v313_v1 }
  0x17   :  { %274 = vmatpush3.msra.mxu1 %v113_v16 }
  0x18   :  { %275 = vmatprep.subr.mxu1 %v313_v1 }
  0x19   :  { %276 = vmatpush3.msra.mxu1 %v112_v17 }
  0x1a   :  { %277 = vmatprep.subr.mxu1 %v313_v1 }
  0x1b   :  { %278 = vmatpush3.msra.mxu1 %v111_v18 }
  0x1c   :  { %279 = vmatprep.subr.mxu1 %v313_v1 }
  0x1d   :  { %280 = vmatpush3.msra.mxu1 %v110_v19 }
  0x1e   :  { %281 = vmatprep.subr.mxu1 %v313_v1 }
  0x1f   :  { %282 = vmatpush3.msra.mxu1 %v109_v20 }
  0x20   :  { %283 = vmatprep.subr.mxu1 %v313_v1 }
  0x21   :  { %284 = vmatpush3.msra.mxu1 %v108_v21 }
  0xc9   :  { %v103_v23 = vpop.f32.mrf.mxu0 }
  0xca   :  { %v104_v24 = vadd.f32 %v217_v22, %v103_v23 }
  0xcb   :  { %v252_v25 = vpop.f32.mrf.mxu0 }
  0xcc   :  { %v107_v26 = vmax.f32 %v104_v24, 0.0 }
  0xce   :  { %286 = vmatmul.mubr.f32.vlgmr.msra.gmra.mxu1 %v107_v26 }
 0x18e   :  { %v197_v28 = vpop.f32.mrf.mxu1 }
 0x18f   :  { %v198_v29 = vadd.f32 %v219_v27, %v197_v28 }
 0x190   :  { %v287_v30 = vpop.f32.mrf.mxu1 }
 0x191   :  { %202 = vst.msk [vmem:[#allocation2] sm:$0xff] %vm201_vm2, %v198_v29 }
 0x192   :  { %302 = shalt.err (!%p299_p4)
}
 0x193   :  { %212 = dma.vmem_to_hbm [thread:$0]  %s210_s0, 128, %s447_s5, [#allocation3]  }
 0x194   :  { %311 = dma.done.wait [#allocation3], 128  }
 0x195   :  { %312 = vsyncadd [#allocation3], 4294967168 }
 0x196   :  { %216 = vsyncpa [#allocation3], 1 }

</bundles_post_ra>
